<compile_context>
chip_gen: v5e
topology: v5e:2x2
jax: 0.10.0
libtpu: 0.0.40
codegen_flags: <defaults>
</compile_context>

<pallas_src>
import jax
import jax.numpy as jnp
from jax.experimental import pallas as pl
from jax.experimental.pallas import tpu as pltpu

_LANE = 128
_SUBLANE = 8
_VMEM_BUDGET = 40 * 1024 * 1024   # sizing budget: fits v7x's 64 MiB VMEM with headroom
_VMEM_LIMIT = 48 * 1024 * 1024    # explicit scoped-VMEM limit handed to the compiler


def _round_up(n: int, m: int) -> int:
    return ((n + m - 1) // m) * m


def _round_down(n: int, m: int) -> int:
    return (n // m) * m


def _softplus(x):
    # Numerically stable softplus: max(x,0) + log1p(exp(-|x|)).
    # exp/log1p go to the EUP slot; kept in f32 for accuracy on all gens.
    return jnp.maximum(x, 0.0) + jnp.log1p(jnp.exp(-jnp.abs(x)))


def _make_fcnn_kernel(num_hidden: int):
    """Fused MLP over one batch tile.

    refs = (x, [w_t, b] * num_hidden, w_out_t, b_out, o).
    Weights may be bf16 (MXU fast path); biases/activations/accumulation f32.
    Eval-mode BatchNorm is already folded into the weights/biases host-side.
    """

    def kernel(*refs):
        x_ref, o_ref = refs[0], refs[-1]
        h = x_ref[...]
        idx = 1
        for _ in range(num_hidden):
            w_ref, b_ref = refs[idx], refs[idx + 1]
            idx += 2
            z = jnp.dot(h.astype(w_ref.dtype), w_ref[...],
                        preferred_element_type=jnp.float32)
            z = z + b_ref[...].astype(jnp.float32)
            h = _softplus(z)
        w_ref, b_ref = refs[idx], refs[idx + 1]
        out = jnp.dot(h.astype(w_ref.dtype), w_ref[...],
                      preferred_element_type=jnp.float32)
        out = out + b_ref[...].astype(jnp.float32)
        o_ref[...] = out.astype(o_ref.dtype)

    return kernel


def _as_2d(x):
    if x.ndim == 0:
        return x.reshape(1, 1)
    if x.ndim == 1:
        return x[:, None]
    if x.ndim == 2:
        return x
    return x.reshape(-1, x.shape[-1])


def fcnn_forward_pallas(x, hidden_params, out_params, out_dim=None, *, tile_bs: int = 4096):
    """FCNN.forward (eval-mode BN folded into the params).

    hidden_params: list of (w_t (in,h) [bf16/f32], b (1,h) f32), BN folded in.
    out_params:    (w_out_t (h, out_padded), b_out (1, out_padded)).
    Handles 0-d / 1-d / 2-d / N-d inputs like the PyTorch module.
    """
    x2 = _as_2d(x)
    bs, d_in = x2.shape
    itemsize = x2.dtype.itemsize

    w_out_t, b_out = out_params
    if out_dim is None:
        out_dim = w_out_t.shape[1]
    # Lane-dense output store: zero-pad the output linear to a multiple of 128
    # columns (zero columns are sliced away below), writeback stays dense.
    out_pad = _round_up(out_dim, _LANE)
    if w_out_t.shape[1] != out_pad:
        w_out_t = jnp.pad(w_out_t, ((0, 0), (0, out_pad - w_out_t.shape[1])))
        b_out = jnp.pad(b_out, ((0, 0), (0, out_pad - b_out.shape[1])))

    flat_params = []
    for (w_t, b) in hidden_params:
        flat_params += [w_t, b]
    flat_params += [w_out_t, b_out]
    param_bytes = sum(int(a.size) * a.dtype.itemsize for a in flat_params)

    # Batch tile: as large as the VMEM budget allows (amortizes the ~0.35us
    # per-grid-step overhead), a multiple of 8 sublanes, no host-side padding
    # of x (Pallas handles the partial last block), and >= 2 grid steps when
    # possible so v7x can shard the batch across its two TensorCores.
    act_bytes_per_row = 2 * (d_in + out_pad) * itemsize
    budget = max(_VMEM_BUDGET - 2 * param_bytes, 64 * 1024)
    tile = min(int(tile_bs), max(_SUBLANE, budget // act_bytes_per_row))
    if bs > _SUBLANE:
        tile = min(tile, _round_up(pl.cdiv(bs, 2), _SUBLANE))
    tile = max(_SUBLANE, _round_down(tile, _SUBLANE))
    tile = min(tile, _round_up(bs, _SUBLANE))
    grid = (pl.cdiv(bs, tile),)

    # Advisory cost estimate for XLA's scheduler.
    flops = 0
    for (w_t, _) in hidden_params:
        flops += 2 * bs * int(w_t.shape[0]) * int(w_t.shape[1])
    flops += 2 * bs * int(w_out_t.shape[0]) * int(w_out_t.shape[1])
    transcendentals = 2 * bs * sum(int(w_t.shape[1]) for (w_t, _) in hidden_params)
    bytes_accessed = bs * d_in * itemsize + bs * out_pad * itemsize + param_bytes
    cost = pl.CostEstimate(flops=flops, transcendentals=transcendentals,
                           bytes_accessed=bytes_accessed)

    kernel = _make_fcnn_kernel(len(hidden_params))
    x_spec = pl.BlockSpec((tile, d_in), lambda i: (i, 0))
    out_spec = pl.BlockSpec((tile, out_pad), lambda i: (i, 0))
    compiler_params = pltpu.CompilerParams(
        dimension_semantics=("parallel",), vmem_limit_bytes=_VMEM_LIMIT)

    def build(single_buffer_params: bool):
        in_specs = [x_spec]
        for arr in flat_params:
            if single_buffer_params:
                # Params never change across the grid: a single VMEM buffer
                # halves their resident footprint (matters most on v7x's
                # 64 MiB VMEM).
                spec = pl.BlockSpec(arr.shape, lambda i: (0, 0),
                                    pipeline_mode=pl.Buffered(1))
            else:
                spec = pl.BlockSpec(arr.shape, lambda i: (0, 0))
            in_specs.append(spec)
        return pl.pallas_call(
            kernel,
            out_shape=jax.ShapeDtypeStruct((bs, out_pad), x2.dtype),
            grid=grid,
            in_specs=in_specs,
            out_specs=out_spec,
            compiler_params=compiler_params,
            cost_estimate=cost,
        )

    try:
        out = build(True)(x2, *flat_params)
    except Exception:
        # pl.Buffered(1) unsupported on this jax/libtpu -> default buffering.
        out = build(False)(x2, *flat_params)

    out = out[:, :out_dim]
    if x.ndim <= 2:
        return out
    return out.reshape(*x.shape[:-1], out_dim)


class FCNNPallas:
    """JAX/Pallas port of the PyTorch FCNN (inference-mode BatchNorm).

    Per hidden layer: Linear -> Softplus -> BatchNorm1d(eval, running stats).
    BN scale/shift are folded host-side (once) into the *following* linear's
    weight/bias; the last hidden block folds into the output linear.
    Weights are stored in `mxu_dtype` (default bf16) for the MXU fast path.
    """

    # TODO(synk): training-mode BatchNorm1d (cross-batch statistics and
    #             running-stat updates) is not implemented; eval-mode only.

    def __init__(self, input_size, hidden_size, output_size, num_layers, key,
                 batch_norm: bool = True, mxu_dtype=jnp.bfloat16):
        self.eps = 1e-5
        self.out_dim = output_size
        f32 = jnp.float32
        keys = jax.random.split(key, 6 * num_layers + 2)
        ki = 0

        def linear_init(fan_in, fan_out):
            nonlocal ki
            bound = 1.0 / (fan_in ** 0.5)
            w = jax.random.uniform(keys[ki], (fan_in, fan_out), f32, -bound, bound)
            b = jax.random.uniform(keys[ki + 1], (1, fan_out), f32, -bound, bound)
            ki += 2
            return w, b   # weight stored pre-transposed: (in, out)

        # Raw (unfolded, f32) parameters — same structure as the PyTorch module.
        self.raw_hidden = []   # (w_t, b, gamma, beta, mean, var)
        d_prev = input_size
        for _ in range(num_layers):
            w_t, b = linear_init(d_prev, hidden_size)
            if batch_norm:
                gamma = 1.0 + 0.1 * jax.random.normal(keys[ki], (1, hidden_size), f32)
                beta = 0.1 * jax.random.normal(keys[ki + 1], (1, hidden_size), f32)
                mean = 0.2 * jax.random.normal(keys[ki + 2], (1, hidden_size), f32)
                var = 1.0 + 0.1 * jnp.abs(
                    jax.random.normal(keys[ki + 3], (1, hidden_size), f32))
            else:
                gamma = jnp.ones((1, hidden_size), f32)
                beta = jnp.zeros((1, hidden_size), f32)
                mean = jnp.zeros((1, hidden_size), f32)
                var = jnp.ones((1, hidden_size), f32)
            ki += 4
            self.raw_hidden.append((w_t, b, gamma, beta, mean, var))
            d_prev = hidden_size
        self.raw_out = linear_init(hidden_size, output_size)

        # Fold eval-mode BN (scale/shift) into the next linear, once, host-side.
        self.hidden_params = []
        prev = None   # (scale, shift) of the preceding BatchNorm
        for (w_t, b, gamma, beta, mean, var) in self.raw_hidden:
            if prev is not None:
                p_scale, p_shift = prev
                b = b + p_shift @ w_t                  # fold shift into this bias
                w_t = p_scale.reshape(-1, 1) * w_t     # fold scale into this weight
            self.hidden_params.append((w_t.astype(mxu_dtype), b.astype(f32)))
            scale = gamma / jnp.sqrt(var + self.eps)
            shift = beta - mean * scale
            prev = (scale, shift)

        w_out_t, b_out = self.raw_out
        p_scale, p_shift = prev
        b_out = b_out + p_shift @ w_out_t
        w_out_t = p_scale.reshape(-1, 1) * w_out_t
        # Lane-pad the output linear so the kernel's output store is 128-dense.
        out_pad = _round_up(output_size, _LANE)
        w_out_t = jnp.pad(w_out_t, ((0, 0), (0, out_pad - output_size)))
        b_out = jnp.pad(b_out, ((0, 0), (0, out_pad - output_size)))
        self.out_params = (w_out_t.astype(mxu_dtype), b_out.astype(f32))

    def forward(self, x):
        return fcnn_forward_pallas(x, self.hidden_params, self.out_params, self.out_dim)

    def forward_ref(self, x):
        """Pure-JAX reference with the same folded/bf16 numerics as the kernel."""
        x2 = _as_2d(x)
        h = x2.astype(jnp.float32)
        for (w_t, b) in self.hidden_params:
            z = jnp.dot(h.astype(w_t.dtype), w_t, preferred_element_type=jnp.float32) + b
            h = _softplus(z)
        w_out_t, b_out = self.out_params
        out = jnp.dot(h.astype(w_out_t.dtype), w_out_t,
                      preferred_element_type=jnp.float32) + b_out
        out = out[:, :self.out_dim].astype(x2.dtype)
        if x.ndim <= 2:
            return out
        return out.reshape(*x.shape[:-1], self.out_dim)

    def forward_ref_raw(self, x):
        """Pure-JAX f32 reference with un-folded BatchNorm (PyTorch semantics)."""
        x2 = _as_2d(x)
        h = x2.astype(jnp.float32)
        for (w_t, b, gamma, beta, mean, var) in self.raw_hidden:
            a = _softplus(h @ w_t + b)
            h = (a - mean) / jnp.sqrt(var + self.eps) * gamma + beta
        w_out_t, b_out = self.raw_out
        out = (h @ w_out_t + b_out).astype(x2.dtype)
        if x.ndim <= 2:
            return out
        return out.reshape(*x.shape[:-1], out.shape[-1])


if __name__ == "__main__":
    key = jax.random.PRNGKey(0)
    k_param, k_x1, k_x2 = jax.random.split(key, 3)

    input_size, hidden_size, output_size, num_layers = 4, 32, 3, 3
    model = FCNNPallas(input_size, hidden_size, output_size, num_layers, k_param,
                       batch_norm=True)

    # N-d input exercises the reshape(-1, d) path of FCNN.forward.
    x = jax.random.normal(k_x1, (2, 8, input_size), dtype=jnp.float32)
    out = jax.block_until_ready(model.forward(x))
    assert out.shape == (2, 8, output_size), f"bad shape {out.shape}"
    ref = model.forward_ref(x)
    assert jnp.allclose(out, ref, rtol=2e-3, atol=2e-3), "mismatch vs folded reference"
    raw = model.forward_ref_raw(x)
    assert jnp.allclose(out, raw, rtol=1e-1, atol=5e-2), "mismatch vs unfolded f32 reference"

    # 2-D input whose batch does not divide the tile: exercises the
    # partial-last-block path (no host-side padding of x).
    x_odd = jax.random.normal(k_x2, (13, input_size), dtype=jnp.float32)
    out_odd = jax.block_until_ready(model.forward(x_odd))
    assert out_odd.shape == (13, output_size), f"bad shape {out_odd.shape}"
    ref_odd = model.forward_ref(x_odd)
    assert jnp.allclose(out_odd, ref_odd, rtol=2e-3, atol=2e-3), "mismatch (partial block)"

    print("KERNEL_OK")
</pallas_src>

<mosaic_0001>
module attributes {stable_mosaic.version = 11 : i64} {
  func.func @kernel(%arg0: i32, %arg1: memref<8x4xf32, #tpu.memory_space<vmem>>, %arg2: memref<4x32xbf16, #tpu.memory_space<vmem>>, %arg3: memref<1x32xf32, #tpu.memory_space<vmem>>, %arg4: memref<32x32xbf16, #tpu.memory_space<vmem>>, %arg5: memref<1x32xf32, #tpu.memory_space<vmem>>, %arg6: memref<32x32xbf16, #tpu.memory_space<vmem>>, %arg7: memref<1x32xf32, #tpu.memory_space<vmem>>, %arg8: memref<32x128xbf16, #tpu.memory_space<vmem>>, %arg9: memref<1x128xf32, #tpu.memory_space<vmem>>, %arg10: memref<8x128xf32, #tpu.memory_space<vmem>>) attributes {dimension_semantics = [#tpu.dimension_semantics<parallel>], iteration_bounds = array<i64: 2>, scalar_prefetch = 0 : i64, scratch_operands = 0 : i64, tpu.core_type = #tpu.core_type<tc>, window_params = [{transform_indices = @transform_0, window_bounds = array<i64: 8, 4>}, {pipeline_mode = #tpu.pipeline_mode<synchronous>, transform_indices = @transform_1, window_bounds = array<i64: 4, 32>}, {pipeline_mode = #tpu.pipeline_mode<synchronous>, transform_indices = @transform_2, window_bounds = array<i64: 1, 32>}, {pipeline_mode = #tpu.pipeline_mode<synchronous>, transform_indices = @transform_3, window_bounds = array<i64: 32, 32>}, {pipeline_mode = #tpu.pipeline_mode<synchronous>, transform_indices = @transform_4, window_bounds = array<i64: 1, 32>}, {pipeline_mode = #tpu.pipeline_mode<synchronous>, transform_indices = @transform_5, window_bounds = array<i64: 32, 32>}, {pipeline_mode = #tpu.pipeline_mode<synchronous>, transform_indices = @transform_6, window_bounds = array<i64: 1, 32>}, {pipeline_mode = #tpu.pipeline_mode<synchronous>, transform_indices = @transform_7, window_bounds = array<i64: 32, 128>}, {pipeline_mode = #tpu.pipeline_mode<synchronous>, transform_indices = @transform_8, window_bounds = array<i64: 1, 128>}, {transform_indices = @transform_9, window_bounds = array<i64: 8, 128>}]} {
    %c0 = arith.constant 0 : index
    %c0_0 = arith.constant 0 : index
    %0 = vector.load %arg1[%c0, %c0_0] : memref<8x4xf32, #tpu.memory_space<vmem>>, vector<8x4xf32>
    %1 = arith.truncf %0 : vector<8x4xf32> to vector<8x4xbf16>
    %c0_1 = arith.constant 0 : index
    %c0_2 = arith.constant 0 : index
    %2 = vector.load %arg2[%c0_1, %c0_2] : memref<4x32xbf16, #tpu.memory_space<vmem>>, vector<4x32xbf16>
    %cst = arith.constant dense<0.000000e+00> : vector<8x32xf32>
    %3 = tpu.matmul %1, %2, %cst {dimension_numbers = #tpu.dot_dimension_numbers<[1], [0], [0], [1], [0, 0, 1, 1], [], []>} : vector<8x4xbf16>, vector<4x32xbf16>, vector<8x32xf32> -> vector<8x32xf32>
    %c0_3 = arith.constant 0 : index
    %c0_4 = arith.constant 0 : index
    %4 = vector.load %arg3[%c0_3, %c0_4] : memref<1x32xf32, #tpu.memory_space<vmem>>, vector<1x32xf32>
    %5 = vector.broadcast %4 : vector<1x32xf32> to vector<8x32xf32>
    %6 = arith.addf %3, %5 : vector<8x32xf32>
    %cst_5 = arith.constant 0.000000e+00 : f32
    %7 = vector.broadcast %cst_5 : f32 to vector<8x32xf32>
    %8 = arith.maximumf %6, %7 : vector<8x32xf32>
    %9 = math.absf %6 : vector<8x32xf32>
    %cst_6 = arith.constant 0.000000e+00 : f32
    %10 = vector.broadcast %cst_6 : f32 to vector<8x32xf32>
    %11 = arith.subf %10, %9 : vector<8x32xf32>
    %12 = math.exp %11 : vector<8x32xf32>
    %13 = math.log1p %12 : vector<8x32xf32>
    %14 = arith.addf %8, %13 : vector<8x32xf32>
    %15 = arith.truncf %14 : vector<8x32xf32> to vector<8x32xbf16>
    %c0_7 = arith.constant 0 : index
    %c0_8 = arith.constant 0 : index
    %16 = vector.load %arg4[%c0_7, %c0_8] : memref<32x32xbf16, #tpu.memory_space<vmem>>, vector<32x32xbf16>
    %cst_9 = arith.constant dense<0.000000e+00> : vector<8x32xf32>
    %17 = tpu.matmul %15, %16, %cst_9 {dimension_numbers = #tpu.dot_dimension_numbers<[1], [0], [0], [1], [0, 0, 1, 1], [], []>} : vector<8x32xbf16>, vector<32x32xbf16>, vector<8x32xf32> -> vector<8x32xf32>
    %c0_10 = arith.constant 0 : index
    %c0_11 = arith.constant 0 : index
    %18 = vector.load %arg5[%c0_10, %c0_11] : memref<1x32xf32, #tpu.memory_space<vmem>>, vector<1x32xf32>
    %19 = vector.broadcast %18 : vector<1x32xf32> to vector<8x32xf32>
    %20 = arith.addf %17, %19 : vector<8x32xf32>
    %cst_12 = arith.constant 0.000000e+00 : f32
    %21 = vector.broadcast %cst_12 : f32 to vector<8x32xf32>
    %22 = arith.maximumf %20, %21 : vector<8x32xf32>
    %23 = math.absf %20 : vector<8x32xf32>
    %cst_13 = arith.constant 0.000000e+00 : f32
    %24 = vector.broadcast %cst_13 : f32 to vector<8x32xf32>
    %25 = arith.subf %24, %23 : vector<8x32xf32>
    %26 = math.exp %25 : vector<8x32xf32>
    %27 = math.log1p %26 : vector<8x32xf32>
    %28 = arith.addf %22, %27 : vector<8x32xf32>
    %29 = arith.truncf %28 : vector<8x32xf32> to vector<8x32xbf16>
    %c0_14 = arith.constant 0 : index
    %c0_15 = arith.constant 0 : index
    %30 = vector.load %arg6[%c0_14, %c0_15] : memref<32x32xbf16, #tpu.memory_space<vmem>>, vector<32x32xbf16>
    %cst_16 = arith.constant dense<0.000000e+00> : vector<8x32xf32>
    %31 = tpu.matmul %29, %30, %cst_16 {dimension_numbers = #tpu.dot_dimension_numbers<[1], [0], [0], [1], [0, 0, 1, 1], [], []>} : vector<8x32xbf16>, vector<32x32xbf16>, vector<8x32xf32> -> vector<8x32xf32>
    %c0_17 = arith.constant 0 : index
    %c0_18 = arith.constant 0 : index
    %32 = vector.load %arg7[%c0_17, %c0_18] : memref<1x32xf32, #tpu.memory_space<vmem>>, vector<1x32xf32>
    %33 = vector.broadcast %32 : vector<1x32xf32> to vector<8x32xf32>
    %34 = arith.addf %31, %33 : vector<8x32xf32>
    %cst_19 = arith.constant 0.000000e+00 : f32
    %35 = vector.broadcast %cst_19 : f32 to vector<8x32xf32>
    %36 = arith.maximumf %34, %35 : vector<8x32xf32>
    %37 = math.absf %34 : vector<8x32xf32>
    %cst_20 = arith.constant 0.000000e+00 : f32
    %38 = vector.broadcast %cst_20 : f32 to vector<8x32xf32>
    %39 = arith.subf %38, %37 : vector<8x32xf32>
    %40 = math.exp %39 : vector<8x32xf32>
    %41 = math.log1p %40 : vector<8x32xf32>
    %42 = arith.addf %36, %41 : vector<8x32xf32>
    %43 = arith.truncf %42 : vector<8x32xf32> to vector<8x32xbf16>
    %c0_21 = arith.constant 0 : index
    %c0_22 = arith.constant 0 : index
    %44 = vector.load %arg8[%c0_21, %c0_22] : memref<32x128xbf16, #tpu.memory_space<vmem>>, vector<32x128xbf16>
    %cst_23 = arith.constant dense<0.000000e+00> : vector<8x128xf32>
    %45 = tpu.matmul %43, %44, %cst_23 {dimension_numbers = #tpu.dot_dimension_numbers<[1], [0], [0], [1], [0, 0, 1, 1], [], []>} : vector<8x32xbf16>, vector<32x128xbf16>, vector<8x128xf32> -> vector<8x128xf32>
    %c0_24 = arith.constant 0 : index
    %c0_25 = arith.constant 0 : index
    %46 = vector.load %arg9[%c0_24, %c0_25] : memref<1x128xf32, #tpu.memory_space<vmem>>, vector<1x128xf32>
    %47 = vector.broadcast %46 : vector<1x128xf32> to vector<8x128xf32>
    %48 = arith.addf %45, %47 : vector<8x128xf32>
    %c0_26 = arith.constant 0 : index
    %c0_27 = arith.constant 0 : index
    %49 = vector.load %arg10[%c0_26, %c0_27] : memref<8x128xf32, #tpu.memory_space<vmem>>, vector<8x128xf32>
    tpu.vector_store %arg10[%c0_26, %c0_27], %48 {strides = array<i32>} : memref<8x128xf32, #tpu.memory_space<vmem>>, vector<8x128xf32>,
    return
  }
  func.func @transform_0(%arg0: i32) -> (i32, i32) {
    %c0_i32 = arith.constant 0 : i32
    %c0_i32_0 = arith.constant 0 : i32
    return %arg0, %c0_i32 : i32, i32
  }
  func.func @transform_1(%arg0: i32) -> (i32, i32) {
    %c0_i32 = arith.constant 0 : i32
    %c0_i32_0 = arith.constant 0 : i32
    %c0_i32_1 = arith.constant 0 : i32
    return %c0_i32, %c0_i32_0 : i32, i32
  }
  func.func @transform_2(%arg0: i32) -> (i32, i32) {
    %c0_i32 = arith.constant 0 : i32
    %c0_i32_0 = arith.constant 0 : i32
    %c0_i32_1 = arith.constant 0 : i32
    return %c0_i32, %c0_i32_0 : i32, i32
  }
  func.func @transform_3(%arg0: i32) -> (i32, i32) {
    %c0_i32 = arith.constant 0 : i32
    %c0_i32_0 = arith.constant 0 : i32
    %c0_i32_1 = arith.constant 0 : i32
    return %c0_i32, %c0_i32_0 : i32, i32
  }
  func.func @transform_4(%arg0: i32) -> (i32, i32) {
    %c0_i32 = arith.constant 0 : i32
    %c0_i32_0 = arith.constant 0 : i32
    %c0_i32_1 = arith.constant 0 : i32
    return %c0_i32, %c0_i32_0 : i32, i32
  }
  func.func @transform_5(%arg0: i32) -> (i32, i32) {
    %c0_i32 = arith.constant 0 : i32
    %c0_i32_0 = arith.constant 0 : i32
    %c0_i32_1 = arith.constant 0 : i32
    return %c0_i32, %c0_i32_0 : i32, i32
  }
  func.func @transform_6(%arg0: i32) -> (i32, i32) {
    %c0_i32 = arith.constant 0 : i32
    %c0_i32_0 = arith.constant 0 : i32
    %c0_i32_1 = arith.constant 0 : i32
    return %c0_i32, %c0_i32_0 : i32, i32
  }
  func.func @transform_7(%arg0: i32) -> (i32, i32) {
    %c0_i32 = arith.constant 0 : i32
    %c0_i32_0 = arith.constant 0 : i32
    %c0_i32_1 = arith.constant 0 : i32
    return %c0_i32, %c0_i32_0 : i32, i32
  }
  func.func @transform_8(%arg0: i32) -> (i32, i32) {
    %c0_i32 = arith.constant 0 : i32
    %c0_i32_0 = arith.constant 0 : i32
    %c0_i32_1 = arith.constant 0 : i32
    return %c0_i32, %c0_i32_0 : i32, i32
  }
  func.func @transform_9(%arg0: i32) -> (i32, i32) {
    %c0_i32 = arith.constant 0 : i32
    %c0_i32_0 = arith.constant 0 : i32
    return %arg0, %c0_i32 : i32, i32
  }
}

module attributes {stable_mosaic.version = 11 : i64} {
  func.func @kernel(%arg0: i32, %arg1: memref<8x4xf32, #tpu.memory_space<vmem>>, %arg2: memref<4x32xbf16, #tpu.memory_space<vmem>>, %arg3: memref<1x32xf32, #tpu.memory_space<vmem>>, %arg4: memref<32x32xbf16, #tpu.memory_space<vmem>>, %arg5: memref<1x32xf32, #tpu.memory_space<vmem>>, %arg6: memref<32x32xbf16, #tpu.memory_space<vmem>>, %arg7: memref<1x32xf32, #tpu.memory_space<vmem>>, %arg8: memref<32x128xbf16, #tpu.memory_space<vmem>>, %arg9: memref<1x128xf32, #tpu.memory_space<vmem>>, %arg10: memref<8x128xf32, #tpu.memory_space<vmem>>) attributes {dimension_semantics = [#tpu.dimension_semantics<parallel>], iteration_bounds = array<i64: 2>, scalar_prefetch = 0 : i64, scratch_operands = 0 : i64, tpu.core_type = #tpu.core_type<tc>, window_params = [{transform_indices = @transform_0, window_bounds = array<i64: 8, 4>}, {pipeline_mode = #tpu.pipeline_mode<synchronous>, transform_indices = @transform_1, window_bounds = array<i64: 4, 32>}, {pipeline_mode = #tpu.pipeline_mode<synchronous>, transform_indices = @transform_2, window_bounds = array<i64: 1, 32>}, {pipeline_mode = #tpu.pipeline_mode<synchronous>, transform_indices = @transform_3, window_bounds = array<i64: 32, 32>}, {pipeline_mode = #tpu.pipeline_mode<synchronous>, transform_indices = @transform_4, window_bounds = array<i64: 1, 32>}, {pipeline_mode = #tpu.pipeline_mode<synchronous>, transform_indices = @transform_5, window_bounds = array<i64: 32, 32>}, {pipeline_mode = #tpu.pipeline_mode<synchronous>, transform_indices = @transform_6, window_bounds = array<i64: 1, 32>}, {pipeline_mode = #tpu.pipeline_mode<synchronous>, transform_indices = @transform_7, window_bounds = array<i64: 32, 128>}, {pipeline_mode = #tpu.pipeline_mode<synchronous>, transform_indices = @transform_8, window_bounds = array<i64: 1, 128>}, {transform_indices = @transform_9, window_bounds = array<i64: 8, 128>}]} {
    %c0 = arith.constant 0 : index
    %c0_0 = arith.constant 0 : index
    %0 = vector.load %arg1[%c0, %c0_0] : memref<8x4xf32, #tpu.memory_space<vmem>>, vector<8x4xf32>
    %1 = arith.truncf %0 : vector<8x4xf32> to vector<8x4xbf16>
    %c0_1 = arith.constant 0 : index
    %c0_2 = arith.constant 0 : index
    %2 = vector.load %arg2[%c0_1, %c0_2] : memref<4x32xbf16, #tpu.memory_space<vmem>>, vector<4x32xbf16>
    %cst = arith.constant dense<0.000000e+00> : vector<8x32xf32>
    %3 = tpu.matmul %1, %2, %cst {dimension_numbers = #tpu.dot_dimension_numbers<[1], [0], [0], [1], [0, 0, 1, 1], [], []>} : vector<8x4xbf16>, vector<4x32xbf16>, vector<8x32xf32> -> vector<8x32xf32>
    %c0_3 = arith.constant 0 : index
    %c0_4 = arith.constant 0 : index
    %4 = vector.load %arg3[%c0_3, %c0_4] : memref<1x32xf32, #tpu.memory_space<vmem>>, vector<1x32xf32>
    %5 = vector.broadcast %4 : vector<1x32xf32> to vector<8x32xf32>
    %6 = arith.addf %3, %5 : vector<8x32xf32>
    %cst_5 = arith.constant 0.000000e+00 : f32
    %7 = vector.broadcast %cst_5 : f32 to vector<8x32xf32>
    %8 = arith.maximumf %6, %7 : vector<8x32xf32>
    %9 = math.absf %6 : vector<8x32xf32>
    %cst_6 = arith.constant 0.000000e+00 : f32
    %10 = vector.broadcast %cst_6 : f32 to vector<8x32xf32>
    %11 = arith.subf %10, %9 : vector<8x32xf32>
    %12 = math.exp %11 : vector<8x32xf32>
    %13 = math.log1p %12 : vector<8x32xf32>
    %14 = arith.addf %8, %13 : vector<8x32xf32>
    %15 = arith.truncf %14 : vector<8x32xf32> to vector<8x32xbf16>
    %c0_7 = arith.constant 0 : index
    %c0_8 = arith.constant 0 : index
    %16 = vector.load %arg4[%c0_7, %c0_8] : memref<32x32xbf16, #tpu.memory_space<vmem>>, vector<32x32xbf16>
    %cst_9 = arith.constant dense<0.000000e+00> : vector<8x32xf32>
    %17 = tpu.matmul %15, %16, %cst_9 {dimension_numbers = #tpu.dot_dimension_numbers<[1], [0], [0], [1], [0, 0, 1, 1], [], []>} : vector<8x32xbf16>, vector<32x32xbf16>, vector<8x32xf32> -> vector<8x32xf32>
    %c0_10 = arith.constant 0 : index
    %c0_11 = arith.constant 0 : index
    %18 = vector.load %arg5[%c0_10, %c0_11] : memref<1x32xf32, #tpu.memory_space<vmem>>, vector<1x32xf32>
    %19 = vector.broadcast %18 : vector<1x32xf32> to vector<8x32xf32>
    %20 = arith.addf %17, %19 : vector<8x32xf32>
    %cst_12 = arith.constant 0.000000e+00 : f32
    %21 = vector.broadcast %cst_12 : f32 to vector<8x32xf32>
    %22 = arith.maximumf %20, %21 : vector<8x32xf32>
    %23 = math.absf %20 : vector<8x32xf32>
    %cst_13 = arith.constant 0.000000e+00 : f32
    %24 = vector.broadcast %cst_13 : f32 to vector<8x32xf32>
    %25 = arith.subf %24, %23 : vector<8x32xf32>
    %26 = math.exp %25 : vector<8x32xf32>
    %27 = math.log1p %26 : vector<8x32xf32>
    %28 = arith.addf %22, %27 : vector<8x32xf32>
    %29 = arith.truncf %28 : vector<8x32xf32> to vector<8x32xbf16>
    %c0_14 = arith.constant 0 : index
    %c0_15 = arith.constant 0 : index
    %30 = vector.load %arg6[%c0_14, %c0_15] : memref<32x32xbf16, #tpu.memory_space<vmem>>, vector<32x32xbf16>
    %cst_16 = arith.constant dense<0.000000e+00> : vector<8x32xf32>
    %31 = tpu.matmul %29, %30, %cst_16 {dimension_numbers = #tpu.dot_dimension_numbers<[1], [0], [0], [1], [0, 0, 1, 1], [], []>} : vector<8x32xbf16>, vector<32x32xbf16>, vector<8x32xf32> -> vector<8x32xf32>
    %c0_17 = arith.constant 0 : index
    %c0_18 = arith.constant 0 : index
    %32 = vector.load %arg7[%c0_17, %c0_18] : memref<1x32xf32, #tpu.memory_space<vmem>>, vector<1x32xf32>
    %33 = vector.broadcast %32 : vector<1x32xf32> to vector<8x32xf32>
    %34 = arith.addf %31, %33 : vector<8x32xf32>
    %cst_19 = arith.constant 0.000000e+00 : f32
    %35 = vector.broadcast %cst_19 : f32 to vector<8x32xf32>
    %36 = arith.maximumf %34, %35 : vector<8x32xf32>
    %37 = math.absf %34 : vector<8x32xf32>
    %cst_20 = arith.constant 0.000000e+00 : f32
    %38 = vector.broadcast %cst_20 : f32 to vector<8x32xf32>
    %39 = arith.subf %38, %37 : vector<8x32xf32>
    %40 = math.exp %39 : vector<8x32xf32>
    %41 = math.log1p %40 : vector<8x32xf32>
    %42 = arith.addf %36, %41 : vector<8x32xf32>
    %43 = arith.truncf %42 : vector<8x32xf32> to vector<8x32xbf16>
    %c0_21 = arith.constant 0 : index
    %c0_22 = arith.constant 0 : index
    %44 = vector.load %arg8[%c0_21, %c0_22] : memref<32x128xbf16, #tpu.memory_space<vmem>>, vector<32x128xbf16>
    %cst_23 = arith.constant dense<0.000000e+00> : vector<8x128xf32>
    %45 = tpu.matmul %43, %44, %cst_23 {dimension_numbers = #tpu.dot_dimension_numbers<[1], [0], [0], [1], [0, 0, 1, 1], [], []>} : vector<8x32xbf16>, vector<32x128xbf16>, vector<8x128xf32> -> vector<8x128xf32>
    %c0_24 = arith.constant 0 : index
    %c0_25 = arith.constant 0 : index
    %46 = vector.load %arg9[%c0_24, %c0_25] : memref<1x128xf32, #tpu.memory_space<vmem>>, vector<1x128xf32>
    %47 = vector.broadcast %46 : vector<1x128xf32> to vector<8x128xf32>
    %48 = arith.addf %45, %47 : vector<8x128xf32>
    %c0_26 = arith.constant 0 : index
    %c0_27 = arith.constant 0 : index
    %49 = vector.load %arg10[%c0_26, %c0_27] : memref<8x128xf32, #tpu.memory_space<vmem>>, vector<8x128xf32>
    tpu.vector_store %arg10[%c0_26, %c0_27], %48 {strides = array<i32>} : memref<8x128xf32, #tpu.memory_space<vmem>>, vector<8x128xf32>,
    return
  }
  func.func @transform_0(%arg0: i32) -> (i32, i32) {
    %c0_i32 = arith.constant 0 : i32
    %c0_i32_0 = arith.constant 0 : i32
    return %arg0, %c0_i32 : i32, i32
  }
  func.func @transform_1(%arg0: i32) -> (i32, i32) {
    %c0_i32 = arith.constant 0 : i32
    %c0_i32_0 = arith.constant 0 : i32
    %c0_i32_1 = arith.constant 0 : i32
    return %c0_i32, %c0_i32_0 : i32, i32
  }
  func.func @transform_2(%arg0: i32) -> (i32, i32) {
    %c0_i32 = arith.constant 0 : i32
    %c0_i32_0 = arith.constant 0 : i32
    %c0_i32_1 = arith.constant 0 : i32
    return %c0_i32, %c0_i32_0 : i32, i32
  }
  func.func @transform_3(%arg0: i32) -> (i32, i32) {
    %c0_i32 = arith.constant 0 : i32
    %c0_i32_0 = arith.constant 0 : i32
    %c0_i32_1 = arith.constant 0 : i32
    return %c0_i32, %c0_i32_0 : i32, i32
  }
  func.func @transform_4(%arg0: i32) -> (i32, i32) {
    %c0_i32 = arith.constant 0 : i32
    %c0_i32_0 = arith.constant 0 : i32
    %c0_i32_1 = arith.constant 0 : i32
    return %c0_i32, %c0_i32_0 : i32, i32
  }
  func.func @transform_5(%arg0: i32) -> (i32, i32) {
    %c0_i32 = arith.constant 0 : i32
    %c0_i32_0 = arith.constant 0 : i32
    %c0_i32_1 = arith.constant 0 : i32
    return %c0_i32, %c0_i32_0 : i32, i32
  }
  func.func @transform_6(%arg0: i32) -> (i32, i32) {
    %c0_i32 = arith.constant 0 : i32
    %c0_i32_0 = arith.constant 0 : i32
    %c0_i32_1 = arith.constant 0 : i32
    return %c0_i32, %c0_i32_0 : i32, i32
  }
  func.func @transform_7(%arg0: i32) -> (i32, i32) {
    %c0_i32 = arith.constant 0 : i32
    %c0_i32_0 = arith.constant 0 : i32
    %c0_i32_1 = arith.constant 0 : i32
    return %c0_i32, %c0_i32_0 : i32, i32
  }
  func.func @transform_8(%arg0: i32) -> (i32, i32) {
    %c0_i32 = arith.constant 0 : i32
    %c0_i32_0 = arith.constant 0 : i32
    %c0_i32_1 = arith.constant 0 : i32
    return %c0_i32, %c0_i32_0 : i32, i32
  }
  func.func @transform_9(%arg0: i32) -> (i32, i32) {
    %c0_i32 = arith.constant 0 : i32
    %c0_i32_0 = arith.constant 0 : i32
    return %arg0, %c0_i32 : i32, i32
  }
}

</mosaic_0001>

<bundles_post_ra>
// kernel: tpu_custom_call.1
= control target key start
LH: loop header
LB: loop body
LE: loop exit
PB: predicated region body
PF: predicated region fallthrough
CT: control target
= control target key end

     0   :  { %s1092_s0 = inlined_call_operand.vmem [shape: f32[16,4], index: 0, kind: input, shape index: {}]   ;;  %s1093_s1 = inlined_call_operand.vmem [shape: bf16[4,32], index: 1, kind: input, shape index: {}]   ;;  %s1094_s2 = inlined_call_operand.vmem [shape: f32[1,32], index: 2, kind: input, shape index: {}]   ;;  %s1095_s3 = inlined_call_operand.vmem [shape: bf16[32,32], index: 3, kind: input, shape index: {}]   ;;  %s1096_s4 = inlined_call_operand.vmem [shape: f32[1,32], index: 4, kind: input, shape index: {}]   ;;  %s1097_s5 = inlined_call_operand.hbm [shape: bf16[32,32], index: 5, kind: input, shape index: {}]   ;;  %s1098_s6 = inlined_call_operand.vmem [shape: f32[1,32], index: 6, kind: input, shape index: {}]   ;;  %s1099_s7 = inlined_call_operand.hbm [shape: bf16[32,128], index: 7, kind: input, shape index: {}]   ;;  %s1100_s8 = inlined_call_operand.vmem [shape: f32[1,128], index: 8, kind: input, shape index: {}]   ;;  %s1101_s9 = inlined_call_operand.hbm [shape: f32[16,128], index: 9, kind: output, shape index: {}]  }
   0x1   :  { %1102 = sst [smem:[#allocation11_spill]] %s1092_s0 }
   0x2   :  { %14 = vsyncpa [#allocation3], 0 }
   0x3   :  { %15 = vsyncpa [#allocation6], 0 }
   0x4   :  { %16 = vsyncpa [#allocation4], 0 }
   0x5   :  { %18 = vsyncpa [#allocation4 + $0x1], 0  ;;  %s958_s30 = smov 0   ;;  %s960_s10 = smov 0  }
   0x6   :  { %s962_s11 = smov 0   ;;  %s964_s12 = smov 0  }
   0x7 LB: > { %s979_s13 = sadd.s32 4294967295, %s902_s12   ;;  %s646_s14 = sadd.s32 4294967294, %s902_s12   ;;  %s902_s12 = sphi %s964_s12, %s1110_s12   ;;  %s898_s11 = sphi %s962_s11, %s1109_s11   ;;  %s894_s10 = sphi %s960_s10, %s1108_s10   ;;  %s890_s30 = sphi %s958_s30, %s1107_s30  }
   0x8   : > { %s983_s15 = sadd.s32 1, %s902_s12   ;;  %s225_s16 = sadd.s32 1, %s898_s11 }
   0x9   : > { %s222_s17 = ssub.s32 %s902_s12, %s983_s15  ;;  %p235_p0 = scmp.ne.s32.totalorder %s898_s11, %s894_s10 }
   0xa   : > { %p223_p1 = scmp.eq.s32.totalorder %s222_s17, 0  ;;  %p236_p2 = scmp.eq.s32.totalorder %s979_s13, 1 }
   0xb   : > { %p241_p3 = scmp.ne.s32.totalorder %s894_s10, %s890_s30  ;;  %p242_p4 = scmp.eq.s32.totalorder %s646_s14, 1 }
   0xc   : > { %s994_s18 = scalar_select %p223_p1, %s898_s11, %s225_s16  }
   0xd   : > { %p996_p5 = por %p236_p2, %p235_p0  ;;  %p1000_p6 = por %p242_p4, %p241_p3 }
   0xe   : > { %p647_p7 = scmp.ge.s32.totalorder %s902_s12, 1  ;;  %p249_p8 = scmp.lt.s32.totalorder %s902_s12, 3 }
   0xf   : > { %p715_p9 = scmp.eq.s32.totalorder %s979_s13, 0  ;;  %s272_s24 = sshll.u32 %s1097_s5, 4  ;;  %s273_s24 = int_to_ptr.hbm [resolvable:$true] %s272_s24 }
  0x10   : > { %p1007_p10 = pnand %p647_p7, %p249_p8  ;;  %s904_s25 = smov [#allocation2]  }
  0x11   : > { %s274_s26 = sshll.u32 %s904_s25, 4  ;;  %s289_s29 = sshll.u32 %s1099_s7, 4  ;;  %s275_s26 = int_to_ptr.vmem [resolvable:$true] %s274_s26  ;;  %s290_s29 = int_to_ptr.hbm [resolvable:$true] %s289_s29 }
  0x12   : > { %p704_p11 = pneg %p1007_p10  ;;  %s905_s14 = smov 64  }
  0x13   : > { %s906_s16 = smov 4   ;;  %s907_s17 = smov [#allocation5]  }
  0x14   : > { %p705_p12 = pnand %p715_p9, %p704_p11  ;;  %s291_s22 = sshll.u32 %s907_s17, 4  ;;  %s292_s22 = int_to_ptr.vmem [resolvable:$true] %s291_s22 }
  0x15   : > { %317 = sbr.rel (%p1007_p10) target bundleno = 656 (0x290), region = 56 }
  0x16   : > { %707 = dma.hbm_to_vmem [thread:$0]  (!%p705_p12), %s273_s24, 256, %s275_s26, [#allocation3], %s905_s14, %s905_s14, %s906_s16  }
  0x17   : > { %710 = dma.hbm_to_vmem [thread:$0]  (!%p705_p12), %s290_s29, 256, %s292_s22, [#allocation6], %s905_s14, %s905_s14, %s906_s16  }
  0x1a   : > { %877 = dma.done.wait (%p715_p9), [#allocation3], 256  }
  0x1b   : > { %879 = vsyncadd (%p715_p9), [#allocation3], 4294967040 }
  0x1c   : > { %881 = dma.done.wait (%p715_p9), [#allocation6], 256  }
  0x1d   : > { %883 = vsyncadd (%p715_p9), [#allocation6], 4294967040  ;;  %p358_p13 = scmp.lt.s32.totalorder %s979_s13, 1  ;;  %vm374_vm0 = vcmask 1041408   ;;  %s1106_s0 = sld [smem:[#allocation11_spill]]  ;;  %vm370_vm1 = vcmask 31744  }
  0x1e   : > { %v365_v0 = vld [vmem:[%s1093_s1] sm:$0x3]  ;;  %v689_v4 = vld [vmem:[%s1095_s3 + $0x8] sm:$0xff]  ;;  %vm427_vm3 = vcmask 261120   ;;  %v693_v46 = vld [vmem:[#allocation5 + $0x8] sm:$0xff]  ;;  %s355_s27 = sand.u32 1, %s894_s10  }
  0x1f   : > { %s359_s23 = scalar_select %p358_p13, %s979_s13, 1  ;;  %v376_v2 = vsel %vm374_vm0, %v365_v0, 0  ;;  %437 = vmatpush.bf16.msra.mxu1 %v689_v4  ;;  %v688_v5 = vld [vmem:[%s1095_s3] sm:$0xff]  ;;  %v691_v25 = vld [vmem:[#allocation2 + $0x8] sm:$0xff]  ;;  %541 = vmatpush.bf16.msra.mxu3 %v693_v46  ;;  %v692_v47 = vld [vmem:[#allocation5] sm:$0xff] }
  0x20   : > { %385 = vmatpush.bf16.msra.mxu0 %v376_v2  ;;  %v756_v6 = vld [vmem:[%s1094_s2] ss:$0 sm:$0xff]  ;;  %489 = vmatpush.bf16.msra.mxu2 %v691_v25  ;;  %s685_s28 = sshll.u32 %s979_s13, 3  ;;  %s654_s29 = sshll.u32 %s355_s27, 3 }
  0x21   : > { %s655_s24 = sshll.u32 %s359_s23, 3  ;;  %v690_v26 = vld [vmem:[#allocation2] sm:$0xff]  ;;  %s560_s17 = scalar_lea.hbm %s1101_s9, %s685_s28 }
  0x22   : > { %v757_v27 = vld [vmem:[%s1096_s4] ss:$0 sm:$0xff]  ;;  %s564_s25 = sshll.u32 %s560_s17, 4  ;;  %s852_s16 = scalar_lea.hbm %s1101_s9, 16  ;;  %s565_s25 = int_to_ptr.hbm [resolvable:$true] %s564_s25 }
  0x23   : > { %s361_s26 = scalar_lea.vmem %s1106_s0, %s655_s24  ;;  %438 = vmatpush.bf16.msra.mxu1 %v688_v5  ;;  %542 = vmatpush.bf16.msra.mxu3 %v692_v47  ;;  %v758_v48 = vld [vmem:[%s1098_s6] ss:$0 sm:$0xff]  ;;  %s357_s24 = scalar_lea.vmem [#allocation7], %s654_s29 }
  0x24   : > { %v363_v1 = vld [vmem:[%s361_s26] sm:$0xff]  ;;  %490 = vmatpush.bf16.msra.mxu2 %v690_v26  ;;  %s562_s21 = sshll.u32 %s357_s24, 4  ;;  %s550_s26 = scalar_lea.sflag [#allocation4], %s355_s27  ;;  %s563_s21 = int_to_ptr.vmem [resolvable:$true] %s562_s21 }
  0x25   : > { %v364_v3 = vpack.c.bf16 %v363_v1, %v363_v1  ;;  %s846_s13 = sshra.s32 %s565_s25, 4  ;;  %s847_s13 = int_to_ptr.hbm [resolvable:$true] %s846_s13 }
  0x26   : > { %s848_s0 = scalar_lea.hbm %s847_s13, 8  ;;  %p853_p3 = scmp.lt.s32.totalorder %s847_s13, %s1101_s9 }
  0x27   : > { %656 = vmatmul.msk.bf16.vlgmr.msra.gmra.mxu0 %vm370_vm1, %v364_v3  ;;  %v759_v3 = vld [vmem:[%s1100_s8] ss:$0 sm:$0xff]  ;;  %p849_p0 = scmp.ne.s32.totalorder %s847_s13, %s848_s0  ;;  %p854_p4 = scmp.lt.s32.totalorder %s852_s16, %s848_s0 }
  0x29   : > { %p850_p1 = pnand %p849_p0, %p996_p5  ;;  %p855_p7 = por %p854_p4, %p853_p3 }
  0x2b   : > { %p851_p2 = pneg %p850_p1 }
  0x2d   : > { %p856_p8 = pnand %p855_p7, %p851_p2 }
  0xa4   : > { %v387_v7 = vpop.f32.mrf.mxu0 }
  0xa5   : > { %v388_v8 = vadd.f32 %v756_v6, %v387_v7 }
  0xa7   : > { %v392_v9 = vand.u32 2147483647, %v388_v8  ;;  %v391_v21 = vmax.f32 %v388_v8, 0.0 }
  0xa9   : > { %v393_v10 = vsub.f32 0.0, %v392_v9 }
  0xab   : > { %v394_v11 = vmul.f32 1.442695, %v393_v10 }
  0xac   : > { %v389_v12 = vpop.f32.mrf.mxu0 }
  0xad   : > { %760 = vpow2.f32 %v394_v11 }
  0xb3   : > { %v761_v13 = vpop.eup %760 }
  0xb4   : > { %v396_v14 = vadd.f32 1.0, %v761_v13  ;;  %v399_v15 = vmul.f32 -0.5, %v761_v13  ;;  %v402_v17 = vand.u32 2147483647, %v761_v13 }
  0xb6   : > { %762 = vlog2.f32 %v396_v14  ;;  %v400_v16 = vadd.f32 1.0, %v399_v15  ;;  %vm403_vm2 = vcmp.lt.f32.partialorder %v402_v17, 0.0004427343 }
  0xb8   : > { %v401_v20 = vmul.f32 %v761_v13, %v400_v16 }
  0xbc   : > { %v763_v18 = vpop.eup %762 }
  0xbd   : > { %v398_v19 = vmul.f32 0.6931472, %v763_v18 }
  0xbf   : > { %v404_v22 = vsel %vm403_vm2, %v401_v20, %v398_v19 }
  0xc0   : > { %v405_v23 = vadd.f32 %v404_v22, %v391_v21 }
  0xc2   : > { %v406_v24 = vpack.c.bf16 %v405_v23, %v405_v23 }
  0xc4   : > { %665 = vmatmul.msk.bf16.vlgmr.msra.gmra.mxu1 %vm427_vm3, %v406_v24 }
 0x141   : > { %v440_v28 = vpop.f32.mrf.mxu1 }
 0x142   : > { %v441_v29 = vadd.f32 %v757_v27, %v440_v28 }
 0x144   : > { %v445_v30 = vand.u32 2147483647, %v441_v29  ;;  %v444_v42 = vmax.f32 %v441_v29, 0.0 }
 0x146   : > { %v446_v31 = vsub.f32 0.0, %v445_v30 }
 0x148   : > { %v447_v32 = vmul.f32 1.442695, %v446_v31 }
 0x149   : > { %v442_v33 = vpop.f32.mrf.mxu1 }
 0x14a   : > { %764 = vpow2.f32 %v447_v32 }
 0x150   : > { %v765_v34 = vpop.eup %764 }
 0x151   : > { %v449_v35 = vadd.f32 1.0, %v765_v34  ;;  %v452_v36 = vmul.f32 -0.5, %v765_v34  ;;  %v455_v38 = vand.u32 2147483647, %v765_v34 }
 0x153   : > { %766 = vlog2.f32 %v449_v35  ;;  %v453_v37 = vadd.f32 1.0, %v452_v36  ;;  %vm456_vm4 = vcmp.lt.f32.partialorder %v455_v38, 0.0004427343 }
 0x155   : > { %v454_v41 = vmul.f32 %v765_v34, %v453_v37 }
 0x159   : > { %v767_v39 = vpop.eup %766 }
 0x15a   : > { %v451_v40 = vmul.f32 0.6931472, %v767_v39 }
 0x15c   : > { %v457_v43 = vsel %vm456_vm4, %v454_v41, %v451_v40 }
 0x15d   : > { %v458_v44 = vadd.f32 %v457_v43, %v444_v42 }
 0x15f   : > { %v459_v45 = vpack.c.bf16 %v458_v44, %v458_v44 }
 0x161   : > { %674 = vmatmul.msk.bf16.vlgmr.msra.gmra.mxu2 %vm427_vm3, %v459_v45 }
 0x1e4   : > { %v492_v49 = vpop.f32.mrf.mxu2 }
 0x1e5   : > { %v493_v50 = vadd.f32 %v758_v48, %v492_v49 }
 0x1e7   : > { %v497_v51 = vand.u32 2147483647, %v493_v50  ;;  %v496_v63 = vmax.f32 %v493_v50, 0.0 }
 0x1e9   : > { %v498_v52 = vsub.f32 0.0, %v497_v51 }
 0x1eb   : > { %v499_v53 = vmul.f32 1.442695, %v498_v52 }
 0x1ec   : > { %v494_v54 = vpop.f32.mrf.mxu2 }
 0x1ed   : > { %768 = vpow2.f32 %v499_v53 }
 0x1f3   : > { %v769_v55 = vpop.eup %768 }
 0x1f4   : > { %v501_v56 = vadd.f32 1.0, %v769_v55  ;;  %v504_v57 = vmul.f32 -0.5, %v769_v55  ;;  %v507_v59 = vand.u32 2147483647, %v769_v55 }
 0x1f6   : > { %770 = vlog2.f32 %v501_v56  ;;  %v505_v58 = vadd.f32 1.0, %v504_v57  ;;  %vm508_vm5 = vcmp.lt.f32.partialorder %v507_v59, 0.0004427343 }
 0x1f8   : > { %v506_v62 = vmul.f32 %v769_v55, %v505_v58 }
 0x1fc   : > { %v771_v60 = vpop.eup %770 }
 0x1fd   : > { %v503_v61 = vmul.f32 0.6931472, %v771_v60 }
 0x1ff   : > { %v509_v0 = vsel %vm508_vm5, %v506_v62, %v503_v61 }
 0x200   : > { %v510_v1 = vadd.f32 %v509_v0, %v496_v63 }
 0x202   : > { %v511_v2 = vpack.c.bf16 %v510_v1, %v510_v1 }
 0x204   : > { %683 = vmatmul.msk.bf16.vlgmr.msra.gmra.mxu3 %vm427_vm3, %v511_v2 }
 0x287   : > { %v544_v4 = vpop.f32.mrf.mxu3 }
 0x288   : > { %v545_v5 = vadd.f32 %v759_v3, %v544_v4 }
 0x28a   : > { %548 = vst [vmem:[%s357_s24] sm:$0xff] %v545_v5 }
 0x28b   : > { %859 = shalt.err (!%p856_p8)
}
 0x28c   : > { %702 = dma.vmem_to_hbm [thread:$0]  (%p996_p5), %s563_s21, 128, %s565_s25, %s550_s26  }
 0x28f   : > { %v546_v6 = vpop.f32.mrf.mxu3 }
 0x290 PF: > { %p719_p9 = scmp.ge.s32.totalorder %s902_s12, 2  ;;  %s576_s27 = sand.u32 1, %s890_s30  }
 0x291   : > { %s577_s17 = scalar_lea.sflag [#allocation4], %s576_s27 }
 0x292   : > { %p712_p10 = pnand %p719_p9, %p1000_p6 }
 0x294   : > { %p713_p11 = pneg %p712_p10 }
 0x296   : > { %885 = dma.done.wait (%p713_p11), %s577_s17, 128  }
 0x297   : > { %887 = vsyncadd (%p713_p11), %s577_s17, 4294967168  ;;  %p21_p12 = scmp.ge.s32.totalorder %s983_s15, 4   ;;  %s1107_s30 = smov %s894_s10 }
 0x298   : > { %s1108_s10 = smov %s898_s11  ;;  %s1109_s11 = smov %s994_s18 }
 0x299   : > { %s1110_s12 = smov %s983_s15  ;;  %23 = sbr.rel (!%p21_p12) target bundleno = 7 (0x7), region = 100 }
 0x29e   :  { %583 = vsyncpa [#allocation3], 1 }
 0x29f   :  { %585 = vsyncpa [#allocation3 + $0x1], 1 }
 0x2a0   :  { %586 = vsyncpa [#allocation6], 1 }
 0x2a1   :  { %587 = vsyncpa [#allocation4], 1 }
 0x2a2   :  { %589 = vsyncpa [#allocation4 + $0x1], 1 }

// kernel: tpu_custom_call.1
= control target key start
LH: loop header
LB: loop body
LE: loop exit
PB: predicated region body
PF: predicated region fallthrough
CT: control target
= control target key end

     0   :  { %s1092_s0 = inlined_call_operand.vmem [shape: f32[16,4], index: 0, kind: input, shape index: {}]   ;;  %s1093_s1 = inlined_call_operand.vmem [shape: bf16[4,32], index: 1, kind: input, shape index: {}]   ;;  %s1094_s2 = inlined_call_operand.vmem [shape: f32[1,32], index: 2, kind: input, shape index: {}]   ;;  %s1095_s3 = inlined_call_operand.vmem [shape: bf16[32,32], index: 3, kind: input, shape index: {}]   ;;  %s1096_s4 = inlined_call_operand.vmem [shape: f32[1,32], index: 4, kind: input, shape index: {}]   ;;  %s1097_s5 = inlined_call_operand.hbm [shape: bf16[32,32], index: 5, kind: input, shape index: {}]   ;;  %s1098_s6 = inlined_call_operand.vmem [shape: f32[1,32], index: 6, kind: input, shape index: {}]   ;;  %s1099_s7 = inlined_call_operand.hbm [shape: bf16[32,128], index: 7, kind: input, shape index: {}]   ;;  %s1100_s8 = inlined_call_operand.vmem [shape: f32[1,128], index: 8, kind: input, shape index: {}]   ;;  %s1101_s9 = inlined_call_operand.hbm [shape: f32[16,128], index: 9, kind: output, shape index: {}]  }
   0x1   :  { %1102 = sst [smem:[#allocation11_spill]] %s1092_s0 }
   0x2   :  { %14 = vsyncpa [#allocation3], 0 }
   0x3   :  { %15 = vsyncpa [#allocation6], 0 }
   0x4   :  { %16 = vsyncpa [#allocation4], 0 }
   0x5   :  { %18 = vsyncpa [#allocation4 + $0x1], 0  ;;  %s958_s30 = smov 0   ;;  %s960_s10 = smov 0  }
   0x6   :  { %s962_s11 = smov 0   ;;  %s964_s12 = smov 0  }
   0x7 LB: > { %s979_s13 = sadd.s32 4294967295, %s902_s12   ;;  %s646_s14 = sadd.s32 4294967294, %s902_s12   ;;  %s902_s12 = sphi %s964_s12, %s1110_s12   ;;  %s898_s11 = sphi %s962_s11, %s1109_s11   ;;  %s894_s10 = sphi %s960_s10, %s1108_s10   ;;  %s890_s30 = sphi %s958_s30, %s1107_s30  }
   0x8   : > { %s983_s15 = sadd.s32 1, %s902_s12   ;;  %s225_s16 = sadd.s32 1, %s898_s11 }
   0x9   : > { %s222_s17 = ssub.s32 %s902_s12, %s983_s15  ;;  %p235_p0 = scmp.ne.s32.totalorder %s898_s11, %s894_s10 }
   0xa   : > { %p223_p1 = scmp.eq.s32.totalorder %s222_s17, 0  ;;  %p236_p2 = scmp.eq.s32.totalorder %s979_s13, 1 }
   0xb   : > { %p241_p3 = scmp.ne.s32.totalorder %s894_s10, %s890_s30  ;;  %p242_p4 = scmp.eq.s32.totalorder %s646_s14, 1 }
   0xc   : > { %s994_s18 = scalar_select %p223_p1, %s898_s11, %s225_s16  }
   0xd   : > { %p996_p5 = por %p236_p2, %p235_p0  ;;  %p1000_p6 = por %p242_p4, %p241_p3 }
   0xe   : > { %p647_p7 = scmp.ge.s32.totalorder %s902_s12, 1  ;;  %p249_p8 = scmp.lt.s32.totalorder %s902_s12, 3 }
   0xf   : > { %p715_p9 = scmp.eq.s32.totalorder %s979_s13, 0  ;;  %s272_s24 = sshll.u32 %s1097_s5, 4  ;;  %s273_s24 = int_to_ptr.hbm [resolvable:$true] %s272_s24 }
  0x10   : > { %p1007_p10 = pnand %p647_p7, %p249_p8  ;;  %s904_s25 = smov [#allocation2]  }
  0x11   : > { %s274_s26 = sshll.u32 %s904_s25, 4  ;;  %s289_s29 = sshll.u32 %s1099_s7, 4  ;;  %s275_s26 = int_to_ptr.vmem [resolvable:$true] %s274_s26  ;;  %s290_s29 = int_to_ptr.hbm [resolvable:$true] %s289_s29 }
  0x12   : > { %p704_p11 = pneg %p1007_p10  ;;  %s905_s14 = smov 64  }
  0x13   : > { %s906_s16 = smov 4   ;;  %s907_s17 = smov [#allocation5]  }
  0x14   : > { %p705_p12 = pnand %p715_p9, %p704_p11  ;;  %s291_s22 = sshll.u32 %s907_s17, 4  ;;  %s292_s22 = int_to_ptr.vmem [resolvable:$true] %s291_s22 }
  0x15   : > { %317 = sbr.rel (%p1007_p10) target bundleno = 656 (0x290), region = 56 }
  0x16   : > { %707 = dma.hbm_to_vmem [thread:$0]  (!%p705_p12), %s273_s24, 256, %s275_s26, [#allocation3], %s905_s14, %s905_s14, %s906_s16  }
  0x17   : > { %710 = dma.hbm_to_vmem [thread:$0]  (!%p705_p12), %s290_s29, 256, %s292_s22, [#allocation6], %s905_s14, %s905_s14, %s906_s16  }
  0x1a   : > { %877 = dma.done.wait (%p715_p9), [#allocation3], 256  }
  0x1b   : > { %879 = vsyncadd (%p715_p9), [#allocation3], 4294967040 }
  0x1c   : > { %881 = dma.done.wait (%p715_p9), [#allocation6], 256  }
  0x1d   : > { %883 = vsyncadd (%p715_p9), [#allocation6], 4294967040  ;;  %p358_p13 = scmp.lt.s32.totalorder %s979_s13, 1  ;;  %vm374_vm0 = vcmask 1041408   ;;  %s1106_s0 = sld [smem:[#allocation11_spill]]  ;;  %vm370_vm1 = vcmask 31744  }
  0x1e   : > { %v365_v0 = vld [vmem:[%s1093_s1] sm:$0x3]  ;;  %v689_v4 = vld [vmem:[%s1095_s3 + $0x8] sm:$0xff]  ;;  %vm427_vm3 = vcmask 261120   ;;  %v693_v46 = vld [vmem:[#allocation5 + $0x8] sm:$0xff]  ;;  %s355_s27 = sand.u32 1, %s894_s10  }
  0x1f   : > { %s359_s23 = scalar_select %p358_p13, %s979_s13, 1  ;;  %v376_v2 = vsel %vm374_vm0, %v365_v0, 0  ;;  %437 = vmatpush.bf16.msra.mxu1 %v689_v4  ;;  %v688_v5 = vld [vmem:[%s1095_s3] sm:$0xff]  ;;  %v691_v25 = vld [vmem:[#allocation2 + $0x8] sm:$0xff]  ;;  %541 = vmatpush.bf16.msra.mxu3 %v693_v46  ;;  %v692_v47 = vld [vmem:[#allocation5] sm:$0xff] }
  0x20   : > { %385 = vmatpush.bf16.msra.mxu0 %v376_v2  ;;  %v756_v6 = vld [vmem:[%s1094_s2] ss:$0 sm:$0xff]  ;;  %489 = vmatpush.bf16.msra.mxu2 %v691_v25  ;;  %s685_s28 = sshll.u32 %s979_s13, 3  ;;  %s654_s29 = sshll.u32 %s355_s27, 3 }
  0x21   : > { %s655_s24 = sshll.u32 %s359_s23, 3  ;;  %v690_v26 = vld [vmem:[#allocation2] sm:$0xff]  ;;  %s560_s17 = scalar_lea.hbm %s1101_s9, %s685_s28 }
  0x22   : > { %v757_v27 = vld [vmem:[%s1096_s4] ss:$0 sm:$0xff]  ;;  %s564_s25 = sshll.u32 %s560_s17, 4  ;;  %s852_s16 = scalar_lea.hbm %s1101_s9, 16  ;;  %s565_s25 = int_to_ptr.hbm [resolvable:$true] %s564_s25 }
  0x23   : > { %s361_s26 = scalar_lea.vmem %s1106_s0, %s655_s24  ;;  %438 = vmatpush.bf16.msra.mxu1 %v688_v5  ;;  %542 = vmatpush.bf16.msra.mxu3 %v692_v47  ;;  %v758_v48 = vld [vmem:[%s1098_s6] ss:$0 sm:$0xff]  ;;  %s357_s24 = scalar_lea.vmem [#allocation7], %s654_s29 }
  0x24   : > { %v363_v1 = vld [vmem:[%s361_s26] sm:$0xff]  ;;  %490 = vmatpush.bf16.msra.mxu2 %v690_v26  ;;  %s562_s21 = sshll.u32 %s357_s24, 4  ;;  %s550_s26 = scalar_lea.sflag [#allocation4], %s355_s27  ;;  %s563_s21 = int_to_ptr.vmem [resolvable:$true] %s562_s21 }
  0x25   : > { %v364_v3 = vpack.c.bf16 %v363_v1, %v363_v1  ;;  %s846_s13 = sshra.s32 %s565_s25, 4  ;;  %s847_s13 = int_to_ptr.hbm [resolvable:$true] %s846_s13 }
  0x26   : > { %s848_s0 = scalar_lea.hbm %s847_s13, 8  ;;  %p853_p3 = scmp.lt.s32.totalorder %s847_s13, %s1101_s9 }
  0x27   : > { %656 = vmatmul.msk.bf16.vlgmr.msra.gmra.mxu0 %vm370_vm1, %v364_v3  ;;  %v759_v3 = vld [vmem:[%s1100_s8] ss:$0 sm:$0xff]  ;;  %p849_p0 = scmp.ne.s32.totalorder %s847_s13, %s848_s0  ;;  %p854_p4 = scmp.lt.s32.totalorder %s852_s16, %s848_s0 }
  0x29   : > { %p850_p1 = pnand %p849_p0, %p996_p5  ;;  %p855_p7 = por %p854_p4, %p853_p3 }
  0x2b   : > { %p851_p2 = pneg %p850_p1 }
  0x2d   : > { %p856_p8 = pnand %p855_p7, %p851_p2 }
  0xa4   : > { %v387_v7 = vpop.f32.mrf.mxu0 }
  0xa5   : > { %v388_v8 = vadd.f32 %v756_v6, %v387_v7 }
  0xa7   : > { %v392_v9 = vand.u32 2147483647, %v388_v8  ;;  %v391_v21 = vmax.f32 %v388_v8, 0.0 }
  0xa9   : > { %v393_v10 = vsub.f32 0.0, %v392_v9 }
  0xab   : > { %v394_v11 = vmul.f32 1.442695, %v393_v10 }
  0xac   : > { %v389_v12 = vpop.f32.mrf.mxu0 }
  0xad   : > { %760 = vpow2.f32 %v394_v11 }
  0xb3   : > { %v761_v13 = vpop.eup %760 }
  0xb4   : > { %v396_v14 = vadd.f32 1.0, %v761_v13  ;;  %v399_v15 = vmul.f32 -0.5, %v761_v13  ;;  %v402_v17 = vand.u32 2147483647, %v761_v13 }
  0xb6   : > { %762 = vlog2.f32 %v396_v14  ;;  %v400_v16 = vadd.f32 1.0, %v399_v15  ;;  %vm403_vm2 = vcmp.lt.f32.partialorder %v402_v17, 0.0004427343 }
  0xb8   : > { %v401_v20 = vmul.f32 %v761_v13, %v400_v16 }
  0xbc   : > { %v763_v18 = vpop.eup %762 }
  0xbd   : > { %v398_v19 = vmul.f32 0.6931472, %v763_v18 }
  0xbf   : > { %v404_v22 = vsel %vm403_vm2, %v401_v20, %v398_v19 }
  0xc0   : > { %v405_v23 = vadd.f32 %v404_v22, %v391_v21 }
  0xc2   : > { %v406_v24 = vpack.c.bf16 %v405_v23, %v405_v23 }
  0xc4   : > { %665 = vmatmul.msk.bf16.vlgmr.msra.gmra.mxu1 %vm427_vm3, %v406_v24 }
 0x141   : > { %v440_v28 = vpop.f32.mrf.mxu1 }
 0x142   : > { %v441_v29 = vadd.f32 %v757_v27, %v440_v28 }
 0x144   : > { %v445_v30 = vand.u32 2147483647, %v441_v29  ;;  %v444_v42 = vmax.f32 %v441_v29, 0.0 }
 0x146   : > { %v446_v31 = vsub.f32 0.0, %v445_v30 }
 0x148   : > { %v447_v32 = vmul.f32 1.442695, %v446_v31 }
 0x149   : > { %v442_v33 = vpop.f32.mrf.mxu1 }
 0x14a   : > { %764 = vpow2.f32 %v447_v32 }
 0x150   : > { %v765_v34 = vpop.eup %764 }
 0x151   : > { %v449_v35 = vadd.f32 1.0, %v765_v34  ;;  %v452_v36 = vmul.f32 -0.5, %v765_v34  ;;  %v455_v38 = vand.u32 2147483647, %v765_v34 }
 0x153   : > { %766 = vlog2.f32 %v449_v35  ;;  %v453_v37 = vadd.f32 1.0, %v452_v36  ;;  %vm456_vm4 = vcmp.lt.f32.partialorder %v455_v38, 0.0004427343 }
 0x155   : > { %v454_v41 = vmul.f32 %v765_v34, %v453_v37 }
 0x159   : > { %v767_v39 = vpop.eup %766 }
 0x15a   : > { %v451_v40 = vmul.f32 0.6931472, %v767_v39 }
 0x15c   : > { %v457_v43 = vsel %vm456_vm4, %v454_v41, %v451_v40 }
 0x15d   : > { %v458_v44 = vadd.f32 %v457_v43, %v444_v42 }
 0x15f   : > { %v459_v45 = vpack.c.bf16 %v458_v44, %v458_v44 }
 0x161   : > { %674 = vmatmul.msk.bf16.vlgmr.msra.gmra.mxu2 %vm427_vm3, %v459_v45 }
 0x1e4   : > { %v492_v49 = vpop.f32.mrf.mxu2 }
 0x1e5   : > { %v493_v50 = vadd.f32 %v758_v48, %v492_v49 }
 0x1e7   : > { %v497_v51 = vand.u32 2147483647, %v493_v50  ;;  %v496_v63 = vmax.f32 %v493_v50, 0.0 }
 0x1e9   : > { %v498_v52 = vsub.f32 0.0, %v497_v51 }
 0x1eb   : > { %v499_v53 = vmul.f32 1.442695, %v498_v52 }
 0x1ec   : > { %v494_v54 = vpop.f32.mrf.mxu2 }
 0x1ed   : > { %768 = vpow2.f32 %v499_v53 }
 0x1f3   : > { %v769_v55 = vpop.eup %768 }
 0x1f4   : > { %v501_v56 = vadd.f32 1.0, %v769_v55  ;;  %v504_v57 = vmul.f32 -0.5, %v769_v55  ;;  %v507_v59 = vand.u32 2147483647, %v769_v55 }
 0x1f6   : > { %770 = vlog2.f32 %v501_v56  ;;  %v505_v58 = vadd.f32 1.0, %v504_v57  ;;  %vm508_vm5 = vcmp.lt.f32.partialorder %v507_v59, 0.0004427343 }
 0x1f8   : > { %v506_v62 = vmul.f32 %v769_v55, %v505_v58 }
 0x1fc   : > { %v771_v60 = vpop.eup %770 }
 0x1fd   : > { %v503_v61 = vmul.f32 0.6931472, %v771_v60 }
 0x1ff   : > { %v509_v0 = vsel %vm508_vm5, %v506_v62, %v503_v61 }
 0x200   : > { %v510_v1 = vadd.f32 %v509_v0, %v496_v63 }
 0x202   : > { %v511_v2 = vpack.c.bf16 %v510_v1, %v510_v1 }
 0x204   : > { %683 = vmatmul.msk.bf16.vlgmr.msra.gmra.mxu3 %vm427_vm3, %v511_v2 }
 0x287   : > { %v544_v4 = vpop.f32.mrf.mxu3 }
 0x288   : > { %v545_v5 = vadd.f32 %v759_v3, %v544_v4 }
 0x28a   : > { %548 = vst [vmem:[%s357_s24] sm:$0xff] %v545_v5 }
 0x28b   : > { %859 = shalt.err (!%p856_p8)
}
 0x28c   : > { %702 = dma.vmem_to_hbm [thread:$0]  (%p996_p5), %s563_s21, 128, %s565_s25, %s550_s26  }
 0x28f   : > { %v546_v6 = vpop.f32.mrf.mxu3 }
 0x290 PF: > { %p719_p9 = scmp.ge.s32.totalorder %s902_s12, 2  ;;  %s576_s27 = sand.u32 1, %s890_s30  }
 0x291   : > { %s577_s17 = scalar_lea.sflag [#allocation4], %s576_s27 }
 0x292   : > { %p712_p10 = pnand %p719_p9, %p1000_p6 }
 0x294   : > { %p713_p11 = pneg %p712_p10 }
 0x296   : > { %885 = dma.done.wait (%p713_p11), %s577_s17, 128  }
 0x297   : > { %887 = vsyncadd (%p713_p11), %s577_s17, 4294967168  ;;  %p21_p12 = scmp.ge.s32.totalorder %s983_s15, 4   ;;  %s1107_s30 = smov %s894_s10 }
 0x298   : > { %s1108_s10 = smov %s898_s11  ;;  %s1109_s11 = smov %s994_s18 }
 0x299   : > { %s1110_s12 = smov %s983_s15  ;;  %23 = sbr.rel (!%p21_p12) target bundleno = 7 (0x7), region = 100 }
 0x29e   :  { %583 = vsyncpa [#allocation3], 1 }
 0x29f   :  { %585 = vsyncpa [#allocation3 + $0x1], 1 }
 0x2a0   :  { %586 = vsyncpa [#allocation6], 1 }
 0x2a1   :  { %587 = vsyncpa [#allocation4], 1 }
 0x2a2   :  { %589 = vsyncpa [#allocation4 + $0x1], 1 }

</bundles_post_ra>
